<compile_context>
chip_gen: v7x
topology: tpu7x:2x2x1
jax: 0.10.0
libtpu: 0.0.40
codegen_flags: <defaults>
</compile_context>

<pallas_src>
import functools
import math

import jax
import jax.numpy as jnp
from jax import lax
from jax.experimental import pallas as pl
from jax.experimental.pallas import tpu as pltpu


def _round_up(x: int, m: int) -> int:
    return ((x + m - 1) // m) * m


def _sinusoidal_pe(seq_len: int, hdim: int) -> jnp.ndarray:
    """Standard transformer sinusoidal positional encoding table [S, H]."""
    pos = jnp.arange(seq_len, dtype=jnp.float32)[:, None]              # [S, 1]
    div = jnp.exp(
        jnp.arange(0, hdim, 2, dtype=jnp.float32) * (-math.log(10000.0) / hdim)
    )                                                                  # [ceil(H/2)]
    ang = pos * div[None, :]                                           # [S, ceil(H/2)]
    pe = jnp.zeros((seq_len, hdim), dtype=jnp.float32)
    pe = pe.at[:, 0::2].set(jnp.sin(ang))                              # even cols
    pe = pe.at[:, 1::2].set(jnp.cos(ang[:, : hdim // 2]))              # odd cols (odd-H safe)
    return pe


# --------------------------------------------------------------------------
# Small-vocab path: resident table in VMEM + one-hot MXU gather.
# --------------------------------------------------------------------------
def _onehot_embed_pe_kernel(tok_ref, emb_ref, pe_ref, out_ref, *, vocab):
    # tok_ref: (1, B, Ts) int32 token ids for this sequence tile (all batches)
    # emb_ref: (V, H) embedding table, resident in VMEM (constant block index)
    # pe_ref:  (Ts, H) positional-encoding tile
    # out_ref: (B, Ts, H) output tile
    ids = tok_ref[0]                                          # (B, Ts)
    b, ts = ids.shape
    # One-hot gather on the MXU: onehot[b,t,v] = (ids[b,t] == v).
    onehot = (
        ids[..., None] == lax.broadcasted_iota(jnp.int32, (b, ts, vocab), 2)
    ).astype(emb_ref.dtype)                                   # (B, Ts, V)
    emb = jnp.dot(
        onehot.reshape(b * ts, vocab),
        emb_ref[...],
        preferred_element_type=jnp.float32,
        precision=lax.Precision.HIGHEST,                      # exact f32 row pick-out
    ).reshape(b, ts, -1)                                      # (B, Ts, H)
    out_ref[...] = emb + pe_ref[...][None]


# --------------------------------------------------------------------------
# General path: per-row async DMA gather from an HBM-resident table.
# --------------------------------------------------------------------------
def _dma_embed_pe_kernel(tok_smem, emb_hbm, pe_ref, out_ref, gbuf, sem,
                         *, tile_s, s_pad, vocab):
    # tok_smem: [B*S_pad] int32 token ids in SMEM (scalar prefetch)
    # emb_hbm:  [V, H] embedding table, left in HBM (memory_space=pl.ANY)
    # pe_ref:   (Ts, H) positional-encoding tile for this sequence tile (VMEM)
    # out_ref:  (1, Ts, H) output tile
    # gbuf:     (Ts, H) VMEM scratch holding the gathered embedding rows
    # sem:      scalar DMA semaphore shared by the Ts row copies
    si = pl.program_id(0)                 # sequence-tile index
    b = pl.program_id(1)                  # batch index
    base = b * s_pad + si * tile_s        # flat offset of this tile's first token

    def _issue(t, carry):
        tok = tok_smem[base + t]
        tok = jnp.minimum(jnp.maximum(tok, 0), vocab - 1)   # OOB-safe gather index
        pltpu.make_async_copy(
            emb_hbm.at[pl.ds(tok, 1), :],
            gbuf.at[pl.ds(t, 1), :],
            sem,
        ).start()
        return carry

    lax.fori_loop(0, tile_s, _issue, 0)    # Ts row DMAs in flight at once

    def _drain(t, carry):
        # Every row copy has an identical shape, so waiting with a same-shaped
        # descriptor drains exactly one completed copy from the shared sem.
        pltpu.make_async_copy(
            emb_hbm.at[pl.ds(0, 1), :],
            gbuf.at[pl.ds(0, 1), :],
            sem,
        ).wait()
        return carry

    lax.fori_loop(0, tile_s, _drain, 0)

    out_ref[0] = gbuf[...].astype(jnp.float32) + pe_ref[...]


def none_text_encoder(text: jnp.ndarray, emb_table: jnp.ndarray,
                      *, tile_s: int = 256, force_dma_gather: bool = False,
                      vmem_limit_bytes=None):
    """Pallas implementation of NoneTextEncoder.forward.

    text:      [B, S] int32 token ids
    emb_table: [V, H] float32 embedding weights
    returns:   ([B, S, H] float32, None)
    """
    B, S = text.shape
    V, H = emb_table.shape

    ts = min(tile_s, _round_up(S, 8))      # tile rows: multiple of 8, <= tile_s
    s_pad = _round_up(S, ts)               # padded sequence length (ts | s_pad)
    n_s = s_pad // ts

    pe_table = _sinusoidal_pe(s_pad, H)    # [S_pad, H]  (glue: precomputed table)

    tok = jnp.clip(text.astype(jnp.int32), 0, V - 1)
    if s_pad != S:
        tok = jnp.pad(tok, ((0, 0), (0, s_pad - S)))

    # Fast path only when the whole table comfortably fits in VMEM and the
    # one-hot matmul stays cheap; otherwise fall back to the HBM row gather.
    table_bytes = V * H * emb_table.dtype.itemsize
    use_small = (not force_dma_gather) and (V <= 256) and (table_bytes <= (2 << 20))

    if use_small:
        tok3d = tok.reshape(B, n_s, ts).transpose(1, 0, 2)   # [n_s, B, ts]
        kernel = functools.partial(_onehot_embed_pe_kernel, vocab=V)
        grid_spec = pltpu.PrefetchScalarGridSpec(
            num_scalar_prefetch=0,
            grid=(n_s,),
            in_specs=[
                # token-id tile for all batches of this sequence tile
                pl.BlockSpec((1, B, ts), lambda si: (si, 0, 0)),
                # full table, constant block index -> fetched into VMEM once
                pl.BlockSpec((V, H), lambda si: (0, 0)),
                # PE tile keyed on the sequence tile only
                pl.BlockSpec((ts, H), lambda si: (si, 0)),
            ],
            out_specs=pl.BlockSpec((B, ts, H), lambda si: (0, si, 0)),
        )
        out = pl.pallas_call(
            kernel,
            out_shape=jax.ShapeDtypeStruct((B, s_pad, H), jnp.float32),
            grid_spec=grid_spec,
            compiler_params=pltpu.CompilerParams(
                dimension_semantics=("parallel",),
                vmem_limit_bytes=vmem_limit_bytes,
            ),
        )(tok3d, emb_table, pe_table)
    else:
        tok_flat = tok.reshape(-1)         # flat 1-D -> cheap SMEM padding
        kernel = functools.partial(_dma_embed_pe_kernel,
                                   tile_s=ts, s_pad=s_pad, vocab=V)
        grid_spec = pltpu.PrefetchScalarGridSpec(
            num_scalar_prefetch=1,         # token ids land in SMEM
            grid=(n_s, B),                 # sequence tiles outer, batch inner
            in_specs=[
                # embedding table: leave in HBM, gathered manually with row DMAs
                pl.BlockSpec(memory_space=pl.ANY),
                # PE tile: depends only on the outer (si) axis -> DMA'd once per
                # sequence tile and reused across the batch loop
                pl.BlockSpec((ts, H), lambda si, b, tok: (si, 0)),
            ],
            out_specs=pl.BlockSpec((1, ts, H), lambda si, b, tok: (b, si, 0)),
            scratch_shapes=[
                pltpu.VMEM((ts, H), emb_table.dtype),   # gathered embedding rows
                pltpu.SemaphoreType.DMA(()),            # shared DMA semaphore
            ],
        )
        out = pl.pallas_call(
            kernel,
            out_shape=jax.ShapeDtypeStruct((B, s_pad, H), jnp.float32),
            grid_spec=grid_spec,
            compiler_params=pltpu.CompilerParams(
                dimension_semantics=("parallel", "parallel"),
                vmem_limit_bytes=vmem_limit_bytes,
            ),
        )(tok_flat, emb_table, pe_table)

    return out[:, :S, :], None


if __name__ == "__main__":
    # Small deterministic setup consistent with the module:
    #   vocab=32, hidden=32, batch=2, seq=8
    B, S, V, H = 2, 8, 32, 32

    key = jax.random.PRNGKey(0)
    k_emb, k_tok = jax.random.split(key)

    emb_table = jax.random.normal(k_emb, (V, H), dtype=jnp.float32)
    text = jax.random.randint(k_tok, (B, S), 0, V, dtype=jnp.int32)

    # Pure-JAX reference: embedding gather + sinusoidal PE add.
    ref = emb_table[text] + _sinusoidal_pe(S, H)[None, :, :]

    # Fast path (resident table, one-hot MXU gather).
    out_fast, none_a = none_text_encoder(text, emb_table)
    out_fast = jax.block_until_ready(out_fast)
    assert none_a is None
    assert out_fast.shape == (B, S, H)
    # HIGHEST-precision f32 one-hot matmul; tiny tolerance for multi-pass MXU.
    assert jnp.allclose(out_fast, ref, atol=1e-3, rtol=1e-3)

    # General path (HBM table, per-row DMA gather) — forced for coverage.
    out_dma, none_b = none_text_encoder(text, emb_table, force_dma_gather=True)
    out_dma = jax.block_until_ready(out_dma)
    assert none_b is None
    assert out_dma.shape == (B, S, H)
    assert jnp.allclose(out_dma, ref, atol=1e-5, rtol=1e-5)

    print("KERNEL_OK")
</pallas_src>

<mosaic_0001>
module attributes {stable_mosaic.version = 11 : i64} {
  func.func @_onehot_embed_pe_kernel(%arg0: i32, %arg1: memref<1x2x8xi32, #tpu.memory_space<vmem>>, %arg2: memref<32x32xf32, #tpu.memory_space<vmem>>, %arg3: memref<8x32xf32, #tpu.memory_space<vmem>>, %arg4: memref<2x8x32xf32, #tpu.memory_space<vmem>>) attributes {dimension_semantics = [#tpu.dimension_semantics<parallel>], iteration_bounds = array<i64: 1>, scalar_prefetch = 0 : i64, scratch_operands = 0 : i64, tpu.core_type = #tpu.core_type<tc>, window_params = [{transform_indices = @transform_0, window_bounds = array<i64: 1, 2, 8>}, {pipeline_mode = #tpu.pipeline_mode<synchronous>, transform_indices = @transform_1, window_bounds = array<i64: 32, 32>}, {transform_indices = @transform_2, window_bounds = array<i64: 8, 32>}, {transform_indices = @transform_3, window_bounds = array<i64: 2, 8, 32>}]} {
    %c0 = arith.constant 0 : index
    %c0_0 = arith.constant 0 : index
    %c0_1 = arith.constant 0 : index
    %0 = vector.load %arg1[%c0, %c0_0, %c0_1] : memref<1x2x8xi32, #tpu.memory_space<vmem>>, vector<1x2x8xi32>
    %1 = vector.shape_cast %0 : vector<1x2x8xi32> to vector<2x8xi32>
    %2 = vector.shape_cast %1 : vector<2x8xi32> to vector<2x8x1xi32>
    %3 = tpu.iota {dimensions = array<i32: 2>} : vector<2x8x32xi32>
    %4 = vector.broadcast %2 : vector<2x8x1xi32> to vector<2x8x32xi32>
    %5 = arith.cmpi eq, %4, %3 : vector<2x8x32xi32>
    %6 = arith.extui %5 : vector<2x8x32xi1> to vector<2x8x32xi32>
    %7 = arith.sitofp %6 : vector<2x8x32xi32> to vector<2x8x32xf32>
    %8 = vector.shape_cast %7 : vector<2x8x32xf32> to vector<16x32xf32>
    %c0_2 = arith.constant 0 : index
    %c0_3 = arith.constant 0 : index
    %9 = vector.load %arg2[%c0_2, %c0_3] : memref<32x32xf32, #tpu.memory_space<vmem>>, vector<32x32xf32>
    %cst = arith.constant dense<0.000000e+00> : vector<16x32xf32>
    %10 = tpu.matmul %8, %9, %cst {dimension_numbers = #tpu.dot_dimension_numbers<[1], [0], [0], [1], [0, 0, 1, 1], [], []>, precision = #tpu.contract_precision<fp32>} : vector<16x32xf32>, vector<32x32xf32>, vector<16x32xf32> -> vector<16x32xf32>
    %11 = vector.shape_cast %10 : vector<16x32xf32> to vector<2x8x32xf32>
    %c0_4 = arith.constant 0 : index
    %c0_5 = arith.constant 0 : index
    %12 = vector.load %arg3[%c0_4, %c0_5] : memref<8x32xf32, #tpu.memory_space<vmem>>, vector<8x32xf32>
    %13 = vector.shape_cast %12 : vector<8x32xf32> to vector<1x8x32xf32>
    %14 = vector.broadcast %13 : vector<1x8x32xf32> to vector<2x8x32xf32>
    %15 = arith.addf %11, %14 : vector<2x8x32xf32>
    %c0_6 = arith.constant 0 : index
    %c0_7 = arith.constant 0 : index
    %c0_8 = arith.constant 0 : index
    %16 = vector.load %arg4[%c0_6, %c0_7, %c0_8] : memref<2x8x32xf32, #tpu.memory_space<vmem>>, vector<2x8x32xf32>
    tpu.vector_store %arg4[%c0_6, %c0_7, %c0_8], %15 {strides = array<i32>} : memref<2x8x32xf32, #tpu.memory_space<vmem>>, vector<2x8x32xf32>,
    return
  }
  func.func @transform_0(%arg0: i32) -> (i32, i32, i32) {
    %c0_i32 = arith.constant 0 : i32
    %c0_i32_0 = arith.constant 0 : i32
    %c0_i32_1 = arith.constant 0 : i32
    return %arg0, %c0_i32, %c0_i32_0 : i32, i32, i32
  }
  func.func @transform_1(%arg0: i32) -> (i32, i32) {
    %c0_i32 = arith.constant 0 : i32
    %c0_i32_0 = arith.constant 0 : i32
    %c0_i32_1 = arith.constant 0 : i32
    return %c0_i32, %c0_i32_0 : i32, i32
  }
  func.func @transform_2(%arg0: i32) -> (i32, i32) {
    %c0_i32 = arith.constant 0 : i32
    %c0_i32_0 = arith.constant 0 : i32
    return %arg0, %c0_i32 : i32, i32
  }
  func.func @transform_3(%arg0: i32) -> (i32, i32, i32) {
    %c0_i32 = arith.constant 0 : i32
    %c0_i32_0 = arith.constant 0 : i32
    %c0_i32_1 = arith.constant 0 : i32
    return %c0_i32, %arg0, %c0_i32_0 : i32, i32, i32
  }
}

</mosaic_0001>

<bundles_post_ra>
// kernel: tpu_custom_call.1
= control target key start
LH: loop header
LB: loop body
LE: loop exit
PB: predicated region body
PF: predicated region fallthrough
CT: control target
= control target key end

     0   :  { %8 = vsyncpa [#allocation3], 0  ;;  %s1013_s0 = inlined_call_operand.hbm [shape: s32[1,2,8], index: 0, kind: input, shape index: {}]   ;;  %s1014_s1 = inlined_call_operand.hbm [shape: f32[32,32], index: 1, kind: input, shape index: {}]   ;;  %s1015_s2 = inlined_call_operand.hbm [shape: f32[8,32], index: 2, kind: input, shape index: {}]   ;;  %s1016_s3 = inlined_call_operand.hbm [shape: f32[2,8,32], index: 3, kind: output, shape index: {}]  }
   0x1   :  { %9 = vsyncpa [#allocation6], 0 }
   0x2   :  { %10 = vsyncpa [#allocation4], 0  ;;  %s906_s12 = smov [#allocation5]   ;;  %s812_s16 = scalar_lea.hbm %s1014_s1, 512 }
   0x3   :  { %s26_s13 = sshll.u32 %s906_s12, 4  ;;  %p813_p0 = scmp.ne.s32.totalorder %s1014_s1, %s812_s16  ;;  %s27_s13 = int_to_ptr.vmem [resolvable:$true] %s26_s13 }
   0x4   :  { %p816_p1 = scmp.lt.u32.totalorder %s812_s16, %s1014_s1 }
   0x6   :  { %p818_p2 = pnand %p816_p1, %p813_p0 }
   0x8   :  { %821 = shalt.err (!%p818_p2)
}
   0x9   :  { %s822_s21 = scalar_lea.vmem %s27_s13, 512  ;;  %p827_p4 = scmp.lt.s32.totalorder %s27_s13, %s27_s13 }
   0xa   :  { %p823_p3 = scmp.ne.s32.totalorder %s27_s13, %s822_s21  ;;  %p828_p5 = scmp.lt.s32.totalorder %s822_s21, %s822_s21 }
   0xc   :  { %p829_p6 = por %p828_p5, %p827_p4 }
   0xe   :  { %p830_p7 = pnand %p829_p6, %p823_p3 }
  0x10   :  { %833 = shalt.err (!%p830_p7)
}
  0x11   :  { %s907_s22 = smov 128   ;;  %s908_s23 = smov 8  }
  0x12   :  { %32 = dma.hbm_to_vmem [thread:$0]  %s1014_s1, 512, %s27_s13, [#allocation6], %s907_s22, %s907_s22, %s908_s23  }
  0x13   :  { %s909_s26 = smov [#allocation2]   ;;  %s910_s28 = smov [#allocation7]  }
  0x14   :  { %s17_s27 = sshll.u32 %s909_s26, 4  ;;  %s39_s29 = sshll.u32 %s910_s28, 4  ;;  %s18_s27 = int_to_ptr.vmem [resolvable:$true] %s17_s27  ;;  %s40_s29 = int_to_ptr.vmem [resolvable:$true] %s39_s29 }
  0x15   :  { %s834_s5 = scalar_lea.hbm %s1013_s0, 32 }
  0x16   :  { %p835_p8 = scmp.ne.s32.totalorder %s1013_s0, %s834_s5  ;;  %p838_p9 = scmp.lt.u32.totalorder %s834_s5, %s1013_s0 }
  0x18   :  { %p840_p10 = pnand %p838_p9, %p835_p8 }
  0x1a   :  { %843 = shalt.err (!%p840_p10)
}
  0x1b   :  { %s844_s1 = scalar_lea.vmem %s18_s27, 32  ;;  %p849_p12 = scmp.lt.s32.totalorder %s18_s27, %s18_s27 }
  0x1c   :  { %p845_p11 = scmp.ne.s32.totalorder %s18_s27, %s844_s1  ;;  %p850_p13 = scmp.lt.s32.totalorder %s844_s1, %s844_s1 }
  0x1e   :  { %p851_p0 = por %p850_p13, %p849_p12 }
  0x20   :  { %p852_p1 = pnand %p851_p0, %p845_p11 }
  0x22   :  { %855 = shalt.err (!%p852_p1)
}
  0x23   :  { %20 = dma.hbm_to_vmem [thread:$0]  %s1013_s0, 32, %s18_s27, [#allocation3]  }
  0x24   :  { %s856_s14 = scalar_lea.hbm %s1015_s2, 128 }
  0x25   :  { %p857_p2 = scmp.ne.s32.totalorder %s1015_s2, %s856_s14  ;;  %p860_p3 = scmp.lt.u32.totalorder %s856_s14, %s1015_s2 }
  0x27   :  { %p862_p4 = pnand %p860_p3, %p857_p2 }
  0x29   :  { %865 = shalt.err (!%p862_p4)
}
  0x2a   :  { %s866_s19 = scalar_lea.vmem %s40_s29, 128  ;;  %p871_p6 = scmp.lt.s32.totalorder %s40_s29, %s40_s29 }
  0x2b   :  { %p867_p5 = scmp.ne.s32.totalorder %s40_s29, %s866_s19  ;;  %p872_p7 = scmp.lt.s32.totalorder %s866_s19, %s866_s19 }
  0x2d   :  { %p873_p8 = por %p872_p7, %p871_p6 }
  0x2f   :  { %p874_p9 = pnand %p873_p8, %p867_p5 }
  0x31   :  { %877 = shalt.err (!%p874_p9)
}
  0x32   :  { %42 = dma.hbm_to_vmem [thread:$0]  %s1015_s2, 128, %s40_s29, [#allocation6]  }
  0x33   :  { %900 = dma.done.wait [#allocation3], 32  }
  0x34   :  { %901 = vsyncadd [#allocation3], 4294967264 }
  0x35   :  { %902 = dma.done.wait [#allocation6], 640  }
  0x36   :  { %903 = vsyncadd [#allocation6], 4294966656  ;;  %v53_v0 = vlaneseq  ;;  %v52_v4 = vld [vmem:[#allocation2] sm:$0x3]  ;;  %v75_v5 = vld [vmem:[#allocation5] sm:$0xff]  ;;  %vm79_vm0 = vcmask 261120  }
  0x37   :  { %v76_v6 = vld [vmem:[#allocation5 + $0x8] sm:$0xff]  ;;  %v87_v8 = vand.u32 4294901760, %v75_v5  ;;  %v77_v10 = vld [vmem:[#allocation5 + $0x10] sm:$0xff]  ;;  %v78_v11 = vld [vmem:[#allocation5 + $0x18] sm:$0xff]  ;;  %v911_v41 = vmov 0.0   ;;  %s912_s2 = smov [#allocation8]  }
  0x38   :  { %v54_v1 = vshrl.u32 %v53_v0, 7  ;;  %v90_v9 = vand.u32 4294901760, %v76_v6  ;;  %v93_v12 = vand.u32 4294901760, %v77_v10  ;;  %v96_v13 = vand.u32 4294901760, %v78_v11  ;;  %v614_v58 = vld [vmem:[#allocation7] sm:$0xff]  ;;  %s624_s21 = sshll.u32 %s912_s2, 4  ;;  %s625_s21 = int_to_ptr.vmem [resolvable:$true] %s624_s21 }
  0x39   :  { %v177_v16 = vsub.f32 %v75_v5, %v87_v8  ;;  %v68_v39 = vand.u32 127, %v53_v0  ;;  %s878_s24 = scalar_lea.vmem %s625_s21, 256  ;;  %p883_p11 = scmp.lt.s32.totalorder %s625_s21, %s625_s21 }
  0x3a   :  { %v55_v2 = vsub.s32 0, %v54_v1  ;;  %v62_v3 = vsub.s32 1, %v54_v1  ;;  %v972_v15 = vpack.c.bf16 %v90_v9, %v87_v8  ;;  %v184_v17 = vsub.f32 %v76_v6, %v90_v9  ;;  %p879_p10 = scmp.ne.s32.totalorder %s625_s21, %s878_s24  ;;  %p884_p12 = scmp.lt.s32.totalorder %s878_s24, %s878_s24 }
  0x3b   :  { %v974_v18 = vpack.c.bf16 %v96_v13, %v93_v12  ;;  %v191_v19 = vsub.f32 %v77_v10, %v93_v12  ;;  %v198_v20 = vsub.f32 %v78_v11, %v96_v13  ;;  %v178_v21 = vand.u32 4294901760, %v177_v16 }
  0x3c   :  { %v56_v7 = vrot.slane %v52_v4, %v55_v2  ;;  %v63_v14 = vrot.slane %v52_v4, %v62_v3  ;;  %772 = vmatprep.subr.bf16.mxu0 %v972_v15  ;;  %748 = vmatprep.subr.bf16.mxu1 %v972_v15  ;;  %v185_v22 = vand.u32 4294901760, %v184_v17  ;;  %v763_v36 = vpack.c.bf16 %v184_v17, %v177_v16  ;;  %p885_p13 = por %p884_p12, %p883_p11 }
  0x3d   :  { %774 = vmatpush3.bf16.msra.mxu0 %v972_v15  ;;  %750 = vmatpush3.bf16.msra.mxu1 %v972_v15  ;;  %v192_v23 = vand.u32 4294901760, %v191_v19  ;;  %v199_v24 = vand.u32 4294901760, %v198_v20  ;;  %v179_v26 = vsub.f32 %v177_v16, %v178_v21  ;;  %v767_v38 = vpack.c.bf16 %v198_v20, %v191_v19 }
  0x3e   :  { %58 = vbcast.lane.b32.xlu0 %v56_v7, 256  ;;  %776 = vmatprep.subr.bf16.mxu0 %v974_v18  ;;  %v779_v25 = vpack.c.bf16 %v185_v22, %v178_v21  ;;  %v186_v27 = vsub.f32 %v184_v17, %v185_v22  ;;  %p886_p0 = pnand %p885_p13, %p879_p10 }
  0x3f   :  { %752 = vmatprep.subr.bf16.mxu1 %v974_v18  ;;  %v783_v28 = vpack.c.bf16 %v199_v24, %v192_v23  ;;  %v193_v29 = vsub.f32 %v191_v19, %v192_v23  ;;  %v200_v30 = vsub.f32 %v198_v20, %v199_v24  ;;  %v180_v31 = vand.u32 4294901760, %v179_v26 }
  0x40   :  { %v187_v32 = vand.u32 4294901760, %v186_v27 }
  0x41   :  { %778 = vmatpush3.bf16.msra.mxu0 %v974_v18  ;;  %754 = vmatpush3.bf16.msra.mxu1 %v974_v18  ;;  %v194_v33 = vand.u32 4294901760, %v193_v29  ;;  %v201_v34 = vand.u32 4294901760, %v200_v30 }
  0x42   :  { %65 = vbcast.lane.b32.xlu0 %v63_v14, 256  ;;  %780 = vmatprep.subr.bf16.mxu0 %v779_v25  ;;  %v755_v35 = vpack.c.bf16 %v187_v32, %v180_v31 }
  0x43   :  { %v759_v37 = vpack.c.bf16 %v201_v34, %v194_v33 }
  0x44   :  { %756 = vmatprep.subr.bf16.mxu1 %v755_v35 }
  0xb0   :  { %v59_v40 = vpop.permute.xlu0 %58 }
  0xb1   :  { %vm69_vm1 = vcmp.eq.s32.totalorder %v59_v40, %v68_v39 }
  0xb2   :  { %v637_v42 = vsel %vm69_vm1, 1.0, %v911_v41 }
  0xb3   :  { %v81_v43 = vsel %vm79_vm0, %v637_v42, 0 }
  0xb4   :  { %v156_v44 = vsub.f32 %v81_v43, %v81_v43  ;;  %v66_v45 = vpop.permute.xlu0 %65 }
  0xb5   :  { %vm70_vm2 = vcmp.eq.s32.totalorder %v66_v45, %v68_v39 }
  0xb6   :  { %v638_v46 = vsel %vm70_vm2, 1.0, %v911_v41  ;;  %v157_v47 = vand.u32 4294901760, %v156_v44 }
  0xb7   :  { %v84_v48 = vsel %vm79_vm0, %v638_v46, 0 }
  0xb8   :  { %v166_v49 = vsub.f32 %v84_v48, %v84_v48  ;;  %722 = vmatprep.mubr.f32.mxu0 %v157_v47  ;;  %v158_v50 = vsub.f32 %v156_v44, %v157_v47 }
  0xba   :  { %v159_v51 = vand.u32 4294901760, %v158_v50  ;;  %v167_v52 = vand.u32 4294901760, %v166_v49 }
  0xbc   :  { %689 = vmatprep.mubr.f32.mxu1 %v159_v51  ;;  %723 = vmatmul.mubr.f32.vlgmr.msra.gmra.mrb[0].mxu0 %v167_v52  ;;  %v168_v53 = vsub.f32 %v166_v49, %v167_v52 }
  0xbd   :  { %782 = vmatpush3.bf16.msra.mxu0 %v779_v25  ;;  %733 = vmatprep.mubr.msk.f32.mxu0 %vm79_vm0, %v637_v42 }
  0xbe   :  { %v169_v54 = vand.u32 4294901760, %v168_v53  ;;  %784 = vmatprep.subr.bf16.mxu0 %v783_v28 }
  0xc0   :  { %690 = vmatmul.mubr.f32.vlgmr.msra.gmra.mrb[0].mxu1 %v169_v54 }
  0xc1   :  { %758 = vmatpush3.bf16.msra.mxu1 %v755_v35  ;;  %700 = vmatprep.mubr.msk.f32.mxu1 %vm79_vm0, %v637_v42 }
  0xc2   :  { %786 = vmatpush3.bf16.msra.mxu0 %v783_v28  ;;  %760 = vmatprep.subr.bf16.mxu1 %v759_v37 }
  0xc3   :  { %788 = vmatprep.subr.bf16.mxu0 %v972_v15 }
  0xc5   :  { %762 = vmatpush3.bf16.msra.mxu1 %v759_v37  ;;  %734 = vmatmul.mubr.msk.f32.vlgmr.msra.gmra.mrb[0].mxu0 %vm79_vm0, %v638_v46 }
  0xc6   :  { %790 = vmatpush3.bf16.msra.mxu0 %v972_v15  ;;  %744 = vmatprep.mubr.msk.f32.mxu0 %vm79_vm0, %v637_v42 }
  0xc7   :  { %764 = vmatprep.subr.bf16.mxu1 %v763_v36  ;;  %792 = vmatprep.subr.bf16.mxu0 %v974_v18 }
  0xc8   :  { %701 = vmatmul.mubr.msk.f32.vlgmr.msra.gmra.mrb[0].mxu1 %vm79_vm0, %v638_v46 }
  0xc9   :  { %766 = vmatpush3.bf16.msra.mxu1 %v763_v36  ;;  %711 = vmatprep.mubr.f32.mxu1 %v156_v44 }
  0xca   :  { %794 = vmatpush3.bf16.msra.mxu0 %v974_v18  ;;  %768 = vmatprep.subr.bf16.mxu1 %v767_v38 }
  0xcd   :  { %770 = vmatpush3.bf16.msra.mxu1 %v767_v38  ;;  %745 = vmatmul.mubr.msk.f32.vlgmr.msra.gmra.mrb[0].mxu0 %vm79_vm0, %v638_v46 }
  0xd0   :  { %712 = vmatmul.mubr.f32.vlgmr.msra.gmra.mrb[0].mxu1 %v166_v49 }
 0x1a0   :  { %v746_v55 = vpop.f32.mrb[0].mxu0 }
 0x1a1   :  { %v604_v56 = vpop.f32.mrb[1].mxu0 }
 0x1a3   :  { %v713_v57 = vpop.f32.mrb[0].mxu1 }
 0x1a4   :  { %v795_v59 = vadd.f32 %v746_v55, %v713_v57  ;;  %v348_v60 = vpop.f32.mrb[1].mxu1 }
 0x1a5   :  { %v796_v61 = vadd.f32 %v604_v56, %v348_v60 }
 0x1a6   :  { %v616_v62 = vadd.f32 %v795_v59, %v614_v58 }
 0x1a7   :  { %v615_v63 = vadd.f32 %v796_v61, %v614_v58 }
 0x1a8   :  { %618 = vst.msk [vmem:[#allocation8 + $0x8] sm:$0xff] %vm79_vm0, %v616_v62 }
 0x1a9   :  { %617 = vst.msk [vmem:[#allocation8] sm:$0xff] %vm79_vm0, %v615_v63 }
 0x1aa   :  { %889 = shalt.err (!%p886_p0)
}
 0x1ab   :  { %s890_s27 = scalar_lea.hbm %s1016_s3, 256 }
 0x1ac   :  { %p891_p1 = scmp.ne.s32.totalorder %s1016_s3, %s890_s27  ;;  %p894_p2 = scmp.lt.u32.totalorder %s890_s27, %s1016_s3 }
 0x1ae   :  { %p896_p3 = pnand %p894_p2, %p891_p1 }
 0x1b0   :  { %899 = shalt.err (!%p896_p3)
}
 0x1b1   :  { %630 = dma.vmem_to_hbm [thread:$0]  %s625_s21, 256, %s1016_s3, [#allocation4], %s907_s22, %s907_s22, %s908_s23  }
 0x1b2   :  { %904 = dma.done.wait [#allocation4], 256  }
 0x1b3   :  { %905 = vsyncadd [#allocation4], 4294967040 }
 0x1b4   :  { %634 = vsyncpa [#allocation3], 1 }
 0x1b5   :  { %635 = vsyncpa [#allocation6], 1 }
 0x1b6   :  { %636 = vsyncpa [#allocation4], 1 }

</bundles_post_ra>
